<compile_context>
chip_gen: v7x
topology: tpu7x:2x2x1
jax: 0.10.0
libtpu: 0.0.40
codegen_flags: <defaults>
</compile_context>

<pallas_src>
import jax
import jax.numpy as jnp
from jax.experimental import pallas as pl
from jax.experimental.pallas import tpu as pltpu

_NUM_CORES = 2     # v7x has 2 TensorCores/chip; a size-2 "parallel" axis is
                   # simply a serial loop (neutral) on single-TC v5e/v6e.
_SUBLANE = 8


def _round_up(x, m):
    return ((x + m - 1) // m) * m


def _vmem_capacity_bytes():
    try:
        info = pltpu.get_tpu_info()
        cap = getattr(info, "vmem_capacity_bytes", None)
        if cap:
            return int(cap)
    except Exception:
        pass
    return None


def _make_kernel(b_actual, tb, spc, hoist_sig):
    """Fused kernel: sum of per-row softmax CE for 3 heads sharing a batch.

    Grid: (core p in [0, 2), local step i in [0, spc)).
    Output block per core: (8, 128) f32; row 0 lanes 0/1/2 hold the partial
    CE sums for base / sig0 / sig1. The 1/B mean and cross-core sum happen in
    the wrapper.
    """

    def kernel(*refs):
        out_ref = refs[-1]
        p = pl.program_id(0)
        i = pl.program_id(1)
        # Logical (unclamped) batch-block index for this step. The DMA
        # index_map clamps it; the row-validity mask below zeroes any
        # duplicated / garbage rows, including fully-dummy steps on core 1.
        row0 = (p * spc + i) * tb

        @pl.when(i == 0)
        def _init():
            out_ref[...] = jnp.zeros_like(out_ref)

        # Row-validity mask: computed once per step, shared by all heads.
        row_ids = row0 + jax.lax.broadcasted_iota(jnp.int32, (tb, 1), 0)
        valid = row_ids < b_actual

        def ce_sum(x, labels_col, valid_mask):
            # Sum over rows of numerically stable softmax cross-entropy.
            x = x.astype(jnp.float32)
            row_max = jnp.max(x, axis=-1, keepdims=True)
            shifted = x - row_max
            sum_exp = jnp.sum(jnp.exp(shifted), axis=-1, keepdims=True)
            cls = jax.lax.broadcasted_iota(jnp.int32, x.shape, 1)
            # select-reduce: no one-hot f32 materialization, no extra multiply.
            correct = jnp.sum(jnp.where(cls == labels_col, shifted, 0.0),
                              axis=-1, keepdims=True)
            per_row = jnp.log(sum_exp) - correct
            if valid_mask is not None:
                # Cheap (TB, 1) mask only: garbage rows in ragged edge blocks
                # never leak into other rows' reductions.
                per_row = jnp.where(valid_mask, per_row, 0.0)
            return jnp.sum(per_row)

        srow = jax.lax.broadcasted_iota(jnp.int32, out_ref.shape, 0)
        lane = jax.lax.broadcasted_iota(jnp.int32, out_ref.shape, 1)

        def lane_val(lane_idx, v):
            return jnp.where((srow == 0) & (lane == lane_idx), v, 0.0)

        if hoist_sig:
            base_lbl_ref, sig_lbl_ref, base_ref, sig0_ref, sig1_ref = refs[:-1]
            p_base = ce_sum(base_ref[...], base_lbl_ref[...], valid)
            out_ref[...] += lane_val(0, p_base)

            # Tiny coarse heads are resident full-batch blocks: compute once
            # (core 0 only, first step only). Full blocks are exact, no mask.
            @pl.when((i == 0) & (p == 0))
            def _sig_once():
                sig_lbls = sig_lbl_ref[...]
                s0 = ce_sum(sig0_ref[...], sig_lbls[:, 0:1], None)
                s1 = ce_sum(sig1_ref[...], sig_lbls[:, 1:2], None)
                out_ref[...] += lane_val(1, s0) + lane_val(2, s1)
        else:
            lbl_ref, base_ref, sig0_ref, sig1_ref = refs[:-1]
            lbls = lbl_ref[...]
            out_ref[...] += (
                lane_val(0, ce_sum(base_ref[...], lbls[:, 0:1], valid))
                + lane_val(1, ce_sum(sig0_ref[...], lbls[:, 1:2], valid))
                + lane_val(2, ce_sum(sig1_ref[...], lbls[:, 2:3], valid)))

    return kernel


def fused_cross_entropy(base_logits, sig0_logits, sig1_logits,
                        base_labels, sig_labels):
    """Mean softmax cross-entropy for the fine head + 2 coarse heads.

    base_logits: (B, C_base), sig*_logits: (B, C_c) — native dtype (no upcast,
    no wrapper pad). base_labels: (B, 1) int32, sig_labels: (B, 2) int32.
    Returns three f32 scalars (mean CE for base / sig0 / sig1).
    """
    assert base_logits.ndim == 2 and sig0_logits.ndim == 2 and sig1_logits.ndim == 2
    b, c_base = base_logits.shape
    c0 = sig0_logits.shape[1]
    c1 = sig1_logits.shape[1]
    assert b >= 1
    itemsize = jnp.dtype(base_logits.dtype).itemsize

    # Hoist the tiny coarse heads to resident full-batch VMEM blocks when small.
    sig_resident_bytes = b * (c0 + c1) * itemsize + b * 2 * 4
    hoist_sig = sig_resident_bytes <= (4 << 20)

    # Generation-aware VMEM budget for the pipelined batch tiles.
    cap = _vmem_capacity_bytes() or (64 << 20)           # conservative (v7x) default
    budget = max(8 << 20, min(40 << 20, cap // 5))
    if hoist_sig:
        budget = max(4 << 20, budget - sig_resident_bytes)
    vmem_limit = int(max(32 << 20, min(cap * 3 // 4, 112 << 20)))

    # Bytes per batch row: double-buffered input tiles + f32 compute temporaries.
    tiled_cols_bytes = c_base * itemsize + 4              # base logits + label col
    temp_bytes = 3 * c_base * 4
    if not hoist_sig:
        tiled_cols_bytes += (c0 + c1) * itemsize + 2 * 4
        temp_bytes += 3 * (c0 + c1) * 4
    per_row = 2 * tiled_cols_bytes + temp_bytes
    tb = budget // max(per_row, 1)
    tb = max(_SUBLANE, min(2048, (tb // _SUBLANE) * _SUBLANE))
    tb = min(tb, _round_up(b, _SUBLANE))

    n_steps = -(-b // tb)                 # ragged last block allowed (no pad)
    spc = -(-n_steps // _NUM_CORES)       # local steps per core

    def batch_idx(p_idx, i_idx):
        # Clamp so the DMA never targets a block past the array; the kernel's
        # row-validity mask zeroes any duplicated / garbage rows.
        return jnp.minimum(p_idx * spc + i_idx, n_steps - 1)

    if hoist_sig:
        in_specs = [
            pl.BlockSpec((tb, 1), lambda p, i: (batch_idx(p, i), 0)),      # base labels
            pl.BlockSpec((b, 2), lambda p, i: (0, 0)),                      # sig labels (resident)
            pl.BlockSpec((tb, c_base), lambda p, i: (batch_idx(p, i), 0)),  # base logits
            pl.BlockSpec((b, c0), lambda p, i: (0, 0)),                     # sig0 logits (resident)
            pl.BlockSpec((b, c1), lambda p, i: (0, 0)),                     # sig1 logits (resident)
        ]
        args = (base_labels, sig_labels, base_logits, sig0_logits, sig1_logits)
    else:
        labels_all = jnp.concatenate([base_labels, sig_labels], axis=1)     # (B, 3)
        in_specs = [
            pl.BlockSpec((tb, 3), lambda p, i: (batch_idx(p, i), 0)),
            pl.BlockSpec((tb, c_base), lambda p, i: (batch_idx(p, i), 0)),
            pl.BlockSpec((tb, c0), lambda p, i: (batch_idx(p, i), 0)),
            pl.BlockSpec((tb, c1), lambda p, i: (batch_idx(p, i), 0)),
        ]
        args = (labels_all, base_logits, sig0_logits, sig1_logits)

    out = pl.pallas_call(
        _make_kernel(b, tb, spc, hoist_sig),
        out_shape=jax.ShapeDtypeStruct((_NUM_CORES * _SUBLANE, 128), jnp.float32),
        grid=(_NUM_CORES, spc),
        in_specs=in_specs,
        out_specs=pl.BlockSpec((_SUBLANE, 128), lambda p, i: (p, 0)),
        compiler_params=pltpu.CompilerParams(
            dimension_semantics=("parallel", "arbitrary"),
            vmem_limit_bytes=vmem_limit),
        cost_estimate=pl.CostEstimate(
            flops=5 * b * (c_base + c0 + c1),
            transcendentals=b * (c_base + c0 + c1),
            bytes_accessed=(b * (c_base + c0 + c1) * itemsize
                            + b * 3 * 4 + _NUM_CORES * _SUBLANE * 128 * 4)),
    )(*args)

    # Cross-core sum + 1/B finalize live in the wrapper: each core only holds a
    # partial sum in row 0 of its own (8, 128) output block.
    sums = jnp.sum(out[::_SUBLANE, :3], axis=0)           # (3,) f32
    means = sums * jnp.float32(1.0 / b)
    return means[0], means[1], means[2]


def tp_loss_forward(outputs_list, labels_list):
    """JAX/Pallas equivalent of TPLoss.forward.

    outputs_list = [base_logits (B, C_base),
                    [sig0_logits (B, C_coarse), sig1_logits (B, C_coarse)]]
    labels_list  = [base_label (B,) int, coarse_label (B, 2) int]
    (torch.stack over python lists is plain-JAX glue; jnp.asarray stacks.)
    """
    base_logits = jnp.asarray(outputs_list[0])

    def to_2d(x):
        # torch `.squeeze()` equivalent that never drops the batch dim
        # (a bare squeeze would turn (1, C) into (C,) when B == 1).
        x = jnp.asarray(x)
        return x.reshape(x.shape[0], -1)

    sig0_logits = to_2d(outputs_list[1][0])
    sig1_logits = to_2d(outputs_list[1][1])

    base_label = jnp.asarray(labels_list[0]).astype(jnp.int32).reshape(-1, 1)   # (B, 1)
    coarse_label = jnp.asarray(labels_list[1]).astype(jnp.int32)
    coarse_label = coarse_label.reshape(base_label.shape[0], 2)                 # (B, 2)

    base_loss_final, sig_loss_0, sig_loss_1 = fused_cross_entropy(
        base_logits, sig0_logits, sig1_logits, base_label, coarse_label)

    weights = [1, 0.1, 0.1, 0.1, 0.1, 1, 1, 1, 1, 1, 1, 1, 1, 1, 1, 1]
    assert len(weights) >= 13
    loss = (base_loss_final * weights[0]
            + sig_loss_0 * weights[1]
            + sig_loss_1 * weights[2])
    return loss, sig_loss_0, sig_loss_1, base_loss_final


if __name__ == "__main__":
    key = jax.random.PRNGKey(0)
    B = 8            # batch
    C_BASE = 32      # fine-grained classes
    C_COARSE = 4     # coarse classes for the two sig heads

    k1, k2, k3, k4, k5 = jax.random.split(key, 5)
    base_logits = jax.random.normal(k1, (B, C_BASE), dtype=jnp.float32)
    sig0_logits = jax.random.normal(k2, (B, C_COARSE), dtype=jnp.float32)
    sig1_logits = jax.random.normal(k3, (B, C_COARSE), dtype=jnp.float32)

    base_label = jax.random.randint(k4, (B,), 0, C_BASE, dtype=jnp.int32)
    coarse_label = jax.random.randint(k5, (B, 2), 0, C_COARSE, dtype=jnp.int32)

    outputs_list = [base_logits, [sig0_logits, sig1_logits]]
    labels_list = [base_label, coarse_label]

    loss, sig_loss_0, sig_loss_1, base_loss_final = tp_loss_forward(
        outputs_list, labels_list)
    jax.block_until_ready((loss, sig_loss_0, sig_loss_1, base_loss_final))

    # Pure-JAX reference check of the fused Pallas CE kernel.
    def ref_ce(logits, labels):
        lse = jax.nn.logsumexp(logits.astype(jnp.float32), axis=-1)
        correct = jnp.take_along_axis(
            logits.astype(jnp.float32), labels[:, None], axis=-1)[:, 0]
        return jnp.mean(lse - correct)

    ref_base = ref_ce(base_logits, base_label)
    ref_s0 = ref_ce(sig0_logits, coarse_label[:, 0])
    ref_s1 = ref_ce(sig1_logits, coarse_label[:, 1])
    ref_loss = ref_base * 1.0 + ref_s0 * 0.1 + ref_s1 * 0.1
    assert jnp.allclose(base_loss_final, ref_base, atol=1e-5)
    assert jnp.allclose(sig_loss_0, ref_s0, atol=1e-5)
    assert jnp.allclose(sig_loss_1, ref_s1, atol=1e-5)
    assert jnp.allclose(loss, ref_loss, atol=1e-5)

    print("KERNEL_OK")
</pallas_src>

<mosaic_0001>
module attributes {stable_mosaic.version = 11 : i64} {
  func.func @kernel(%arg0: i32, %arg1: i32, %arg2: memref<8x1xi32, #tpu.memory_space<vmem>>, %arg3: memref<8x2xi32, #tpu.memory_space<vmem>>, %arg4: memref<8x32xf32, #tpu.memory_space<vmem>>, %arg5: memref<8x4xf32, #tpu.memory_space<vmem>>, %arg6: memref<8x4xf32, #tpu.memory_space<vmem>>, %arg7: memref<8x128xf32, #tpu.memory_space<vmem>>) attributes {dimension_semantics = [#tpu.dimension_semantics<parallel>, #tpu.dimension_semantics<arbitrary>], iteration_bounds = array<i64: 2, 1>, scalar_prefetch = 0 : i64, scratch_operands = 0 : i64, tpu.core_type = #tpu.core_type<tc>, window_params = [{transform_indices = @transform_0, window_bounds = array<i64: 8, 1>}, {pipeline_mode = #tpu.pipeline_mode<synchronous>, transform_indices = @transform_1, window_bounds = array<i64: 8, 2>}, {transform_indices = @transform_2, window_bounds = array<i64: 8, 32>}, {pipeline_mode = #tpu.pipeline_mode<synchronous>, transform_indices = @transform_3, window_bounds = array<i64: 8, 4>}, {pipeline_mode = #tpu.pipeline_mode<synchronous>, transform_indices = @transform_4, window_bounds = array<i64: 8, 4>}, {transform_indices = @transform_5, window_bounds = array<i64: 8, 128>}]} {
    %c1_i32 = arith.constant 1 : i32
    %0 = arith.muli %arg0, %c1_i32 : i32
    %1 = arith.addi %0, %arg1 : i32
    %c8_i32 = arith.constant 8 : i32
    %2 = arith.muli %1, %c8_i32 : i32
    %c0_i32 = arith.constant 0 : i32
    %3 = arith.cmpi eq, %arg1, %c0_i32 : i32
    %4 = arith.extui %3 : i1 to i32
    %c0_i32_0 = arith.constant 0 : i32
    %5 = arith.cmpi ne, %4, %c0_i32_0 : i32
    scf.if %5 {
      %cst_20 = arith.constant 0.000000e+00 : f32
      %53 = vector.broadcast %cst_20 : f32 to vector<8x128xf32>
      %c0_21 = arith.constant 0 : index
      %c0_22 = arith.constant 0 : index
      %54 = vector.load %arg7[%c0_21, %c0_22] : memref<8x128xf32, #tpu.memory_space<vmem>>, vector<8x128xf32>
      tpu.vector_store %arg7[%c0_21, %c0_22], %53 {strides = array<i32>} : memref<8x128xf32, #tpu.memory_space<vmem>>, vector<8x128xf32>,
    } else {
    }
    %6 = tpu.iota {dimensions = array<i32: 0>} : vector<8x1xi32>
    %7 = vector.broadcast %2 : i32 to vector<8x1xi32>
    %8 = arith.addi %7, %6 : vector<8x1xi32>
    %c8_i32_1 = arith.constant 8 : i32
    %9 = vector.broadcast %c8_i32_1 : i32 to vector<8x1xi32>
    %10 = arith.cmpi slt, %8, %9 : vector<8x1xi32>
    %11 = tpu.iota {dimensions = array<i32: 0>} : vector<8x128xi32>
    %12 = tpu.iota {dimensions = array<i32: 1>} : vector<8x128xi32>
    %c0 = arith.constant 0 : index
    %c0_2 = arith.constant 0 : index
    %13 = vector.load %arg4[%c0, %c0_2] : memref<8x32xf32, #tpu.memory_space<vmem>>, vector<8x32xf32>
    %c0_3 = arith.constant 0 : index
    %c0_4 = arith.constant 0 : index
    %14 = vector.load %arg2[%c0_3, %c0_4] : memref<8x1xi32, #tpu.memory_space<vmem>>, vector<8x1xi32>
    %cst = arith.constant dense<0xFF800000> : vector<8xf32>
    %15 = vector.multi_reduction <maximumf>, %13, %cst [1] : vector<8x32xf32> to vector<8xf32>
    %16 = vector.shape_cast %15 : vector<8xf32> to vector<8x1xf32>
    %17 = vector.broadcast %16 : vector<8x1xf32> to vector<8x32xf32>
    %18 = arith.subf %13, %17 : vector<8x32xf32>
    %19 = math.exp %18 : vector<8x32xf32>
    %cst_5 = arith.constant dense<0.000000e+00> : vector<8xf32>
    %20 = vector.multi_reduction <add>, %19, %cst_5 [1] : vector<8x32xf32> to vector<8xf32>
    %21 = vector.shape_cast %20 : vector<8xf32> to vector<8x1xf32>
    %22 = tpu.iota {dimensions = array<i32: 1>} : vector<8x32xi32>
    %23 = vector.broadcast %14 : vector<8x1xi32> to vector<8x32xi32>
    %24 = arith.cmpi eq, %22, %23 : vector<8x32xi32>
    %cst_6 = arith.constant 0.000000e+00 : f32
    %25 = vector.broadcast %cst_6 : f32 to vector<8x32xf32>
    %26 = arith.select %24, %18, %25 : vector<8x32xi1>, vector<8x32xf32>
    %cst_7 = arith.constant dense<0.000000e+00> : vector<8xf32>
    %27 = vector.multi_reduction <add>, %26, %cst_7 [1] : vector<8x32xf32> to vector<8xf32>
    %28 = vector.shape_cast %27 : vector<8xf32> to vector<8x1xf32>
    %29 = math.log %21 : vector<8x1xf32>
    %30 = arith.subf %29, %28 : vector<8x1xf32>
    %cst_8 = arith.constant 0.000000e+00 : f32
    %31 = vector.broadcast %cst_8 : f32 to vector<8x1xf32>
    %32 = arith.select %10, %30, %31 : vector<8x1xi1>, vector<8x1xf32>
    %33 = vector.shape_cast %32 : vector<8x1xf32> to vector<1x8x1xf32>
    %cst_9 = arith.constant dense<0.000000e+00> : vector<1xf32>
    %34 = vector.multi_reduction <add>, %33, %cst_9 [1, 2] : vector<1x8x1xf32> to vector<1xf32>
    %35 = vector.shape_cast %34 : vector<1xf32> to vector<1x1x1xf32>
    %36 = vector.extract %35[0, 0, 0] : f32 from vector<1x1x1xf32>
    %c0_10 = arith.constant 0 : index
    %c0_11 = arith.constant 0 : index
    %37 = vector.load %arg7[%c0_10, %c0_11] : memref<8x128xf32, #tpu.memory_space<vmem>>, vector<8x128xf32>
    %c0_i32_12 = arith.constant 0 : i32
    %38 = vector.broadcast %c0_i32_12 : i32 to vector<8x128xi32>
    %39 = arith.cmpi eq, %11, %38 : vector<8x128xi32>
    %c0_i32_13 = arith.constant 0 : i32
    %40 = vector.broadcast %c0_i32_13 : i32 to vector<8x128xi32>
    %41 = arith.cmpi eq, %12, %40 : vector<8x128xi32>
    %42 = arith.andi %39, %41 : vector<8x128xi1>
    %cst_14 = arith.constant 0.000000e+00 : f32
    %43 = vector.broadcast %36 : f32 to vector<8x128xf32>
    %44 = vector.broadcast %cst_14 : f32 to vector<8x128xf32>
    %45 = arith.select %42, %43, %44 : vector<8x128xi1>, vector<8x128xf32>
    %46 = arith.addf %37, %45 : vector<8x128xf32>
    %c0_15 = arith.constant 0 : index
    %c0_16 = arith.constant 0 : index
    %47 = vector.load %arg7[%c0_15, %c0_16] : memref<8x128xf32, #tpu.memory_space<vmem>>, vector<8x128xf32>
    tpu.vector_store %arg7[%c0_15, %c0_16], %46 {strides = array<i32>} : memref<8x128xf32, #tpu.memory_space<vmem>>, vector<8x128xf32>,
    %c0_i32_17 = arith.constant 0 : i32
    %48 = arith.cmpi eq, %arg1, %c0_i32_17 : i32
    %c0_i32_18 = arith.constant 0 : i32
    %49 = arith.cmpi eq, %arg0, %c0_i32_18 : i32
    %50 = arith.andi %48, %49 : i1
    %51 = arith.extui %50 : i1 to i32
    %c0_i32_19 = arith.constant 0 : i32
    %52 = arith.cmpi ne, %51, %c0_i32_19 : i32
    scf.if %52 {
      %c0_20 = arith.constant 0 : index
      %c0_21 = arith.constant 0 : index
      %53 = vector.load %arg3[%c0_20, %c0_21] : memref<8x2xi32, #tpu.memory_space<vmem>>, vector<8x2xi32>
      %c0_22 = arith.constant 0 : index
      %c0_23 = arith.constant 0 : index
      %54 = vector.load %arg5[%c0_22, %c0_23] : memref<8x4xf32, #tpu.memory_space<vmem>>, vector<8x4xf32>
      %55 = vector.extract_strided_slice %53 {offsets = [0, 0], sizes = [8, 1], strides = [1, 1]} : vector<8x2xi32> to vector<8x1xi32>
      %cst_24 = arith.constant dense<0xFF800000> : vector<8xf32>
      %56 = vector.multi_reduction <maximumf>, %54, %cst_24 [1] : vector<8x4xf32> to vector<8xf32>
      %57 = vector.shape_cast %56 : vector<8xf32> to vector<8x1xf32>
      %58 = vector.broadcast %57 : vector<8x1xf32> to vector<8x4xf32>
      %59 = arith.subf %54, %58 : vector<8x4xf32>
      %60 = math.exp %59 : vector<8x4xf32>
      %cst_25 = arith.constant dense<0.000000e+00> : vector<8xf32>
      %61 = vector.multi_reduction <add>, %60, %cst_25 [1] : vector<8x4xf32> to vector<8xf32>
      %62 = vector.shape_cast %61 : vector<8xf32> to vector<8x1xf32>
      %63 = tpu.iota {dimensions = array<i32: 1>} : vector<8x4xi32>
      %64 = vector.broadcast %55 : vector<8x1xi32> to vector<8x4xi32>
      %65 = arith.cmpi eq, %63, %64 : vector<8x4xi32>
      %cst_26 = arith.constant 0.000000e+00 : f32
      %66 = vector.broadcast %cst_26 : f32 to vector<8x4xf32>
      %67 = arith.select %65, %59, %66 : vector<8x4xi1>, vector<8x4xf32>
      %cst_27 = arith.constant dense<0.000000e+00> : vector<8xf32>
      %68 = vector.multi_reduction <add>, %67, %cst_27 [1] : vector<8x4xf32> to vector<8xf32>
      %69 = vector.shape_cast %68 : vector<8xf32> to vector<8x1xf32>
      %70 = math.log %62 : vector<8x1xf32>
      %71 = arith.subf %70, %69 : vector<8x1xf32>
      %72 = vector.shape_cast %71 : vector<8x1xf32> to vector<1x8x1xf32>
      %cst_28 = arith.constant dense<0.000000e+00> : vector<1xf32>
      %73 = vector.multi_reduction <add>, %72, %cst_28 [1, 2] : vector<1x8x1xf32> to vector<1xf32>
      %74 = vector.shape_cast %73 : vector<1xf32> to vector<1x1x1xf32>
      %75 = vector.extract %74[0, 0, 0] : f32 from vector<1x1x1xf32>
      %c0_29 = arith.constant 0 : index
      %c0_30 = arith.constant 0 : index
      %76 = vector.load %arg6[%c0_29, %c0_30] : memref<8x4xf32, #tpu.memory_space<vmem>>, vector<8x4xf32>
      %77 = vector.extract_strided_slice %53 {offsets = [0, 1], sizes = [8, 1], strides = [1, 1]} : vector<8x2xi32> to vector<8x1xi32>
      %cst_31 = arith.constant dense<0xFF800000> : vector<8xf32>
      %78 = vector.multi_reduction <maximumf>, %76, %cst_31 [1] : vector<8x4xf32> to vector<8xf32>
      %79 = vector.shape_cast %78 : vector<8xf32> to vector<8x1xf32>
      %80 = vector.broadcast %79 : vector<8x1xf32> to vector<8x4xf32>
      %81 = arith.subf %76, %80 : vector<8x4xf32>
      %82 = math.exp %81 : vector<8x4xf32>
      %cst_32 = arith.constant dense<0.000000e+00> : vector<8xf32>
      %83 = vector.multi_reduction <add>, %82, %cst_32 [1] : vector<8x4xf32> to vector<8xf32>
      %84 = vector.shape_cast %83 : vector<8xf32> to vector<8x1xf32>
      %85 = tpu.iota {dimensions = array<i32: 1>} : vector<8x4xi32>
      %86 = vector.broadcast %77 : vector<8x1xi32> to vector<8x4xi32>
      %87 = arith.cmpi eq, %85, %86 : vector<8x4xi32>
      %cst_33 = arith.constant 0.000000e+00 : f32
      %88 = vector.broadcast %cst_33 : f32 to vector<8x4xf32>
      %89 = arith.select %87, %81, %88 : vector<8x4xi1>, vector<8x4xf32>
      %cst_34 = arith.constant dense<0.000000e+00> : vector<8xf32>
      %90 = vector.multi_reduction <add>, %89, %cst_34 [1] : vector<8x4xf32> to vector<8xf32>
      %91 = vector.shape_cast %90 : vector<8xf32> to vector<8x1xf32>
      %92 = math.log %84 : vector<8x1xf32>
      %93 = arith.subf %92, %91 : vector<8x1xf32>
      %94 = vector.shape_cast %93 : vector<8x1xf32> to vector<1x8x1xf32>
      %cst_35 = arith.constant dense<0.000000e+00> : vector<1xf32>
      %95 = vector.multi_reduction <add>, %94, %cst_35 [1, 2] : vector<1x8x1xf32> to vector<1xf32>
      %96 = vector.shape_cast %95 : vector<1xf32> to vector<1x1x1xf32>
      %97 = vector.extract %96[0, 0, 0] : f32 from vector<1x1x1xf32>
      %c0_36 = arith.constant 0 : index
      %c0_37 = arith.constant 0 : index
      %98 = vector.load %arg7[%c0_36, %c0_37] : memref<8x128xf32, #tpu.memory_space<vmem>>, vector<8x128xf32>
      %c0_i32_38 = arith.constant 0 : i32
      %99 = vector.broadcast %c0_i32_38 : i32 to vector<8x128xi32>
      %100 = arith.cmpi eq, %11, %99 : vector<8x128xi32>
      %c1_i32_39 = arith.constant 1 : i32
      %101 = vector.broadcast %c1_i32_39 : i32 to vector<8x128xi32>
      %102 = arith.cmpi eq, %12, %101 : vector<8x128xi32>
      %103 = arith.andi %100, %102 : vector<8x128xi1>
      %cst_40 = arith.constant 0.000000e+00 : f32
      %104 = vector.broadcast %75 : f32 to vector<8x128xf32>
      %105 = vector.broadcast %cst_40 : f32 to vector<8x128xf32>
      %106 = arith.select %103, %104, %105 : vector<8x128xi1>, vector<8x128xf32>
      %c0_i32_41 = arith.constant 0 : i32
      %107 = vector.broadcast %c0_i32_41 : i32 to vector<8x128xi32>
      %108 = arith.cmpi eq, %11, %107 : vector<8x128xi32>
      %c2_i32 = arith.constant 2 : i32
      %109 = vector.broadcast %c2_i32 : i32 to vector<8x128xi32>
      %110 = arith.cmpi eq, %12, %109 : vector<8x128xi32>
      %111 = arith.andi %108, %110 : vector<8x128xi1>
      %cst_42 = arith.constant 0.000000e+00 : f32
      %112 = vector.broadcast %97 : f32 to vector<8x128xf32>
      %113 = vector.broadcast %cst_42 : f32 to vector<8x128xf32>
      %114 = arith.select %111, %112, %113 : vector<8x128xi1>, vector<8x128xf32>
      %115 = arith.addf %106, %114 : vector<8x128xf32>
      %116 = arith.addf %98, %115 : vector<8x128xf32>
      %c0_43 = arith.constant 0 : index
      %c0_44 = arith.constant 0 : index
      %117 = vector.load %arg7[%c0_43, %c0_44] : memref<8x128xf32, #tpu.memory_space<vmem>>, vector<8x128xf32>
      tpu.vector_store %arg7[%c0_43, %c0_44], %116 {strides = array<i32>} : memref<8x128xf32, #tpu.memory_space<vmem>>, vector<8x128xf32>,
    } else {
    }
    return
  }
  func.func @transform_0(%arg0: i32, %arg1: i32) -> (i32, i32) {
    %c1_i32 = arith.constant 1 : i32
    %0 = arith.muli %arg0, %c1_i32 : i32
    %1 = arith.addi %0, %arg1 : i32
    %c0_i32 = arith.constant 0 : i32
    %2 = arith.minsi %1, %c0_i32 : i32
    %c0_i32_0 = arith.constant 0 : i32
    %c0_i32_1 = arith.constant 0 : i32
    return %2, %c0_i32_0 : i32, i32
  }
  func.func @transform_1(%arg0: i32, %arg1: i32) -> (i32, i32) {
    %c0_i32 = arith.constant 0 : i32
    %c0_i32_0 = arith.constant 0 : i32
    %c0_i32_1 = arith.constant 0 : i32
    return %c0_i32, %c0_i32_0 : i32, i32
  }
  func.func @transform_2(%arg0: i32, %arg1: i32) -> (i32, i32) {
    %c1_i32 = arith.constant 1 : i32
    %0 = arith.muli %arg0, %c1_i32 : i32
    %1 = arith.addi %0, %arg1 : i32
    %c0_i32 = arith.constant 0 : i32
    %2 = arith.minsi %1, %c0_i32 : i32
    %c0_i32_0 = arith.constant 0 : i32
    %c0_i32_1 = arith.constant 0 : i32
    return %2, %c0_i32_0 : i32, i32
  }
  func.func @transform_3(%arg0: i32, %arg1: i32) -> (i32, i32) {
    %c0_i32 = arith.constant 0 : i32
    %c0_i32_0 = arith.constant 0 : i32
    %c0_i32_1 = arith.constant 0 : i32
    return %c0_i32, %c0_i32_0 : i32, i32
  }
  func.func @transform_4(%arg0: i32, %arg1: i32) -> (i32, i32) {
    %c0_i32 = arith.constant 0 : i32
    %c0_i32_0 = arith.constant 0 : i32
    %c0_i32_1 = arith.constant 0 : i32
    return %c0_i32, %c0_i32_0 : i32, i32
  }
  func.func @transform_5(%arg0: i32, %arg1: i32) -> (i32, i32) {
    %c0_i32 = arith.constant 0 : i32
    %c0_i32_0 = arith.constant 0 : i32
    return %arg0, %c0_i32 : i32, i32
  }
}

</mosaic_0001>

<bundles_post_ra>
// kernel: tpu_custom_call.1
= control target key start
LH: loop header
LB: loop body
LE: loop exit
PB: predicated region body
PF: predicated region fallthrough
CT: control target
= control target key end

     0   :  { %10 = vsyncpa [#allocation3], 0  ;;  %s900_s0 = inlined_call_operand.vmem [shape: s32[8,1], index: 0, kind: input, shape index: {}]   ;;  %s901_s1 = inlined_call_operand.vmem [shape: s32[8,2], index: 1, kind: input, shape index: {}]   ;;  %s902_s2 = inlined_call_operand.vmem [shape: f32[8,32], index: 2, kind: input, shape index: {}]   ;;  %s903_s3 = inlined_call_operand.vmem [shape: f32[8,4], index: 3, kind: input, shape index: {}]   ;;  %s904_s4 = inlined_call_operand.vmem [shape: f32[8,4], index: 4, kind: input, shape index: {}]   ;;  %s905_s5 = inlined_call_operand.hbm [shape: f32[16,128], index: 5, kind: output, shape index: {}]  }
   0x1   :  { %12 = vsyncpa [#allocation3 + $0x1], 0  ;;  %s738_s18 = smov 0   ;;  %s740_s19 = smov 0  }
   0x2   :  { %s742_s20 = smov 0   ;;  %s744_s21 = smov 0  }
   0x3   :  { %s746_s22 = smov 0   ;;  %s748_s23 = smov 0  }
   0x4 LB: > { %s522_s24 = sadd.s32 4294967295, %s702_s23   ;;  %s523_s25 = sadd.s32 4294967294, %s702_s23   ;;  %s702_s23 = sphi %s748_s23, %s18_s23   ;;  %s698_s22 = sphi %s746_s22, %s912_s22   ;;  %s694_s21 = sphi %s744_s21, %s911_s21   ;;  %s690_s20 = sphi %s742_s20, %s910_s20   ;;  %s686_s19 = sphi %s740_s19, %s909_s19   ;;  %s682_s18 = sphi %s738_s18, %s908_s18  }
   0x5   : > { %s30_s26 = sadd.s32 1, %s698_s22  ;;  %s164_s27 = sadd.s32 1, %s690_s20 }
   0x6   : > { %p32_p0 = scmp.ge.s32.totalorder %s30_s26, 2  ;;  %p174_p1 = scmp.ne.s32.totalorder %s690_s20, %s686_s19 }
   0x7   : > { %p175_p2 = scmp.eq.s32.totalorder %s522_s24, 1  ;;  %p180_p3 = scmp.ne.s32.totalorder %s686_s19, %s682_s18 }
   0x8   : > { %s914_s26 = smov (%p32_p0, %s30_s26), 0  ;;  %p181_p5 = scmp.eq.s32.totalorder %s523_s25, 1 }
   0x9   : > { %p778_p4 = por %p175_p2, %p174_p1  ;;  %s161_s29 = ssub.s32 %s698_s22, %s914_s26 }
   0xa   : > { %p526_p6 = scmp.ge.s32.totalorder %s702_s23, 1  ;;  %p162_p7 = scmp.eq.s32.totalorder %s161_s29, 0 }
   0xb   : > { %p785_p8 = por %p181_p5, %p180_p3  ;;  %p234_p9 = scmp.lt.s32.totalorder %s702_s23, 3 }
   0xc   : > { %s791_s6 = scalar_select %p162_p7, %s690_s20, %s164_s27  }
   0xd   : > { %p235_p10 = pnand %p526_p6, %p234_p9 }
   0xe   : > { %p272_p11 = scmp.lt.s32.totalorder (!%p235_p10), %s694_s21, 0  ;;  %v704_v0 = vmov (!%p235_p10), 0   ;;  %vm307_vm0 = vcmask (!%p235_p10), 261120   ;;  %v298_v7 = vlaneseq (!%p235_p10)  ;;  %s536_s15 = sshll.u32 (!%p235_p10), %s694_s21, 3  ;;  %vm329_vm3 = vcmask (!%p235_p10), 7168  }
   0xf   : > { %238 = sbr.rel (%p235_p10) target bundleno = 879 (0x36f), region = 40  ;;  %608 = vset.pattern.permute.xlu0 (!%p235_p10), %v704_v0  ;;  %v300_v16 = vstv (!%p235_p10), %s536_s15  ;;  %p348_p12 = scmp.eq.s32.totalorder (!%p235_p10), %s694_s21, 0 }
  0x10   : > { %v802_v8 = vand.u32 (!%p235_p10), 127, %v298_v7  ;;  %v808_v15 = vshrl.u32 (!%p235_p10), %v298_v7, 7  ;;  %s268_s16 = sand.u32 (!%p235_p10), 1, %s686_s19  }
  0x11   : > { %s527_s17 = sshll.u32 (!%p235_p10), %s268_s16, 3 }
  0x12   : > { %v301_v17 = vadd.s32 (!%p235_p10), %v300_v16, %v808_v15  ;;  %vm341_vm4 = vcmp.eq.s32.totalorder (!%p235_p10), %v808_v15, 0  ;;  %vm342_vm5 = vcmp.eq.s32.totalorder (!%p235_p10), %v802_v8, 0  ;;  %s820_s25 = scalar_lea.vmem (!%p235_p10), [#allocation2], %s527_s17 }
  0x13   : > { %vm343_vm6 = vmand (!%p235_p10), %vm341_vm4, %vm342_vm5 }
  0x14   : > { %vm302_vm2 = vcmp.lt.s32.totalorder (!%p235_p10), %v301_v17, 8 }
  0x16   : > { %s273_s7 = scalar_select %p272_p11, %s694_s21, 0 }
  0x17   : > { %v354_v33 = vld [vmem:[%s903_s3] sm:$0xff] (%p348_p12)  ;;  %vm355_vm7 = vcmask (%p348_p12), 31744   ;;  %v705_v37 = vmov (%p348_p12), 0   ;;  %v706_v38 = vmov (%p348_p12), 1   ;;  %vm418_vm10 = vcmp.eq.s32.totalorder (%p348_p12), %v802_v8, 1 }
  0x18   : > { %s916_s7 = smov (!%p272_p11, %s273_s7), 0  ;;  %v386_v34 = vld [vmem:[%s904_s4] sm:$0xff] (%p348_p12)  ;;  %v356_v36 = vsel (%p348_p12), %vm355_vm7, %v354_v33, -inf  ;;  %613 = vset.pattern.permute.xlu1 (%p348_p12), %v705_v37  ;;  %vm422_vm11 = vcmp.eq.s32.totalorder (%p348_p12), %v802_v8, 2  ;;  %vm419_vm12 = vmand (%p348_p12), %vm341_vm4, %vm418_vm10 }
  0x19   : > { %s531_s8 = sshll.u32 %s916_s7, 3  ;;  %v353_v35 = vld [vmem:[%s901_s1] sm:$0xff] (%p348_p12)  ;;  %v387_v39 = vsel (%p348_p12), %vm355_vm7, %v386_v34, -inf  ;;  %vm423_vm13 = vmand (%p348_p12), %vm341_vm4, %vm422_vm11 }
  0x1a   : > { %s287_s11 = scalar_lea.vmem %s902_s2, %s531_s8  ;;  %s277_s14 = scalar_lea.vmem %s900_s0, %s531_s8 }
  0x1b   : > { %v305_v1 = vld [vmem:[%s287_s11] sm:$0xff] }
  0x1c   : > { %v308_v2 = vsel %vm307_vm0, %v305_v1, -inf  ;;  %v306_v3 = vld [vmem:[%s277_s14] sm:$0xff] }
  0x1d   : > { %309 = vmax.xlane.f32.xlu0 %v308_v2 }
  0x33   : > { %318 = vperm.xlu0 %608, %v306_v3  }
  0x37   : > { %615 = vset.pattern.permute.xlu0 (%p348_p12), %v706_v38 }
  0x52   : > { %357 = vmax.xlane.f32.xlu0 (%p348_p12), %v356_v36 }
  0x56   : > { %388 = vmax.xlane.f32.xlu0 (%p348_p12), %v387_v39 }
  0xaa   : > { %v310_v4 = vpop.xlane.xlu0 %309 }
  0xab   : > { %v311_v5 = vsub.f32 %v305_v1, %v310_v4 }
  0xad   : > { %v312_v6 = vmul.f32 1.442695, %v311_v5 }
  0xaf   : > { %609 = vpow2.f32 %v312_v6 }
  0xb2   : > { %v319_v9 = vpop.permute.xlu0 %318 }
  0xb3   : > { %vm320_vm1 = vcmp.eq.s32.totalorder %v802_v8, %v319_v9 }
  0xb4   : > { %v321_v12 = vsel %vm320_vm1, %v311_v5, 0.0 }
  0xb5   : > { %v322_v13 = vsel %vm307_vm0, %v321_v12, 0.0 }
  0xb9   : > { %v610_v10 = vpop.eup %609 }
  0xba   : > { %v314_v11 = vsel %vm307_vm0, %v610_v10, 0.0 }
  0xbb   : > { %315 = vadd.xlane.f32.xlu1 %v314_v11 }
  0xbf   : > { %323 = vadd.xlane.f32.xlu1 %v322_v13 }
  0xdf   : > { %v358_v40 = vpop.xlane.xlu0 (%p348_p12), %357 }
  0xe0   : > { %v359_v41 = vsub.f32 (%p348_p12), %v354_v33, %v358_v40 }
  0xe2   : > { %v360_v42 = vmul.f32 (%p348_p12), 1.442695, %v359_v41 }
  0xe3   : > { %v389_v43 = vpop.xlane.xlu0 (%p348_p12), %388 }
  0xe4   : > { %v390_v44 = vsub.f32 (%p348_p12), %v386_v34, %v389_v43 }
  0xe6   : > { %v391_v45 = vmul.f32 (%p348_p12), 1.442695, %v390_v44 }
 0x148   : > { %v316_v14 = vpop.xlane.xlu1 %315 }
 0x149   : > { %611 = vlog2.f32 %v316_v14 }
 0x14a   : > { %616 = vpow2.f32 (%p348_p12), %v360_v42 }
 0x14b   : > { %618 = vpow2.f32 (%p348_p12), %v391_v45 }
 0x14c   : > { %v324_v20 = vpop.xlane.xlu1 %323 }
 0x153   : > { %v612_v18 = vpop.eup %611 }
 0x154   : > { %v326_v19 = vmul.f32 0.6931472, %v612_v18  ;;  %v617_v47 = vpop.eup (%p348_p12), %616 }
 0x155   : > { %v362_v49 = vsel (%p348_p12), %vm355_vm7, %v617_v47, 0.0  ;;  %v619_v51 = vpop.eup (%p348_p12), %618 }
 0x156   : > { %v327_v21 = vsub.f32 %v326_v19, %v324_v20  ;;  %363 = vadd.xlane.f32.xlu0 (%p348_p12), %v362_v49  ;;  %v393_v52 = vsel (%p348_p12), %vm355_vm7, %v619_v51, 0.0 }
 0x158   : > { %v328_v22 = vsel %vm302_vm2, %v327_v21, 0.0 }
 0x159   : > { %v330_v23 = vsel %vm329_vm3, %v328_v22, 0.0 }
 0x15a   : > { %331 = vadd.xlane.f32.xlu1 %v330_v23 }
 0x16b   : > { %366 = vperm.xlu1 (%p348_p12), %613, %v353_v35  }
 0x16f   : > { %614 = vset.pattern.permute.xlu1 (%p348_p12), %v706_v38 }
 0x170   : > { %397 = vperm.xlu1 (%p348_p12), %614, %v353_v35  }
 0x194   : > { %394 = vadd.xlane.f32.xlu1 (%p348_p12), %v393_v52 }
 0x1e3   : > { %v364_v56 = vpop.xlane.xlu0 (%p348_p12), %363 }
 0x1e4   : > { %620 = vlog2.f32 (%p348_p12), %v364_v56 }
 0x1e7   : > { %v332_v24 = vpop.xlane.xlu1 %331 }
 0x1e8   : > { %v333_v25 = vrot.slane %v332_v24, 4 }
 0x1ea   : > { %v334_v26 = vadd.f32 %v333_v25, %v332_v24 }
 0x1eb   : > { %v367_v46 = vpop.permute.xlu1 (%p348_p12), %366 }
 0x1ec   : > { %v335_v27 = vrot.slane %v334_v26, 2  ;;  %vm368_vm8 = vcmp.eq.s32.totalorder (%p348_p12), %v802_v8, %v367_v46 }
 0x1ed   : > { %v369_v50 = vsel (%p348_p12), %vm368_vm8, %v359_v41, 0.0 }
 0x1ee   : > { %v336_v28 = vadd.f32 %v335_v27, %v334_v26  ;;  %v370_v53 = vsel (%p348_p12), %vm355_vm7, %v369_v50, 0.0  ;;  %v621_v58 = vpop.eup (%p348_p12), %620 }
 0x1ef   : > { %v398_v48 = vpop.permute.xlu1 (%p348_p12), %397  ;;  %371 = vadd.xlane.f32.xlu0 (%p348_p12), %v370_v53  ;;  %v374_v60 = vmul.f32 (%p348_p12), 0.6931472, %v621_v58 }
 0x1f0   : > { %v337_v29 = vrot.slane %v336_v28, 1  ;;  %vm399_vm9 = vcmp.eq.s32.totalorder (%p348_p12), %v802_v8, %v398_v48 }
 0x1f1   : > { %v400_v54 = vsel (%p348_p12), %vm399_vm9, %v390_v44, 0.0 }
 0x1f2   : > { %v338_v30 = vadd.f32 %v337_v29, %v336_v28  ;;  %v401_v55 = vsel (%p348_p12), %vm355_vm7, %v400_v54, 0.0 }
 0x1f3   : > { %402 = vadd.xlane.f32.xlu0 (%p348_p12), %v401_v55 }
 0x1f4   : > { %543 = vpush %v338_v30 }
 0x221   : > { %v395_v57 = vpop.xlane.xlu1 (%p348_p12), %394 }
 0x222   : > { %352 = sbr.rel (!%p348_p12) target bundleno = 855 (0x357), region = 48  ;;  %622 = vlog2.f32 (%p348_p12), %v395_v57 }
 0x225   : > { %s544_s24 = spop %543 }
 0x226   : > { %v344_v31 = vstv %s544_s24 }
 0x227   : > { %v345_v32 = vsel %vm343_vm6, %v344_v31, 0.0 }
 0x228   : > { %347 = vst [vmem:[%s820_s25] sm:$0xff] %v345_v32 }
 0x22c   : > { %v623_v62 = vpop.eup %622 }
 0x22d   : > { %v405_v63 = vmul.f32 0.6931472, %v623_v62 }
 0x22f   : > { %v417_v23 = vld [vmem:[%s820_s25] sm:$0xff] }
 0x27c   : > { %v372_v59 = vpop.xlane.xlu0 %371 }
 0x27d   : > { %v375_v61 = vsub.f32 %v374_v60, %v372_v59 }
 0x27f   : > { %v376_v0 = vsel %vm329_vm3, %v375_v61, 0.0 }
 0x280   : > { %v403_v1 = vpop.xlane.xlu0 %402  ;;  %377 = vadd.xlane.f32.xlu0 %v376_v0 }
 0x281   : > { %v406_v2 = vsub.f32 %v405_v63, %v403_v1 }
 0x283   : > { %v407_v3 = vsel %vm329_vm3, %v406_v2, 0.0 }
 0x284   : > { %408 = vadd.xlane.f32.xlu0 %v407_v3 }
 0x30d   : > { %v378_v4 = vpop.xlane.xlu0 %377 }
 0x30e   : > { %v379_v5 = vrot.slane %v378_v4, 4 }
 0x310   : > { %v380_v6 = vadd.f32 %v379_v5, %v378_v4 }
 0x311   : > { %v409_v7 = vpop.xlane.xlu0 %408 }
 0x312   : > { %v381_v9 = vrot.slane %v380_v6, 2  ;;  %v410_v10 = vrot.slane %v409_v7, 4 }
 0x314   : > { %v411_v11 = vadd.f32 %v410_v10, %v409_v7  ;;  %v382_v12 = vadd.f32 %v381_v9, %v380_v6 }
 0x316   : > { %v412_v13 = vrot.slane %v411_v11, 2  ;;  %v383_v14 = vrot.slane %v382_v12, 1 }
 0x318   : > { %v413_v16 = vadd.f32 %v412_v13, %v411_v11  ;;  %v384_v17 = vadd.f32 %v383_v14, %v382_v12 }
 0x31a   : > { %545 = vpush %v384_v17  ;;  %v414_v18 = vrot.slane %v413_v16, 1 }
 0x31c   : > { %v415_v19 = vadd.f32 %v414_v18, %v413_v16 }
 0x31e   : > { %547 = vpush %v415_v19 }
 0x34b   : > { %s546_s11 = spop %545 }
 0x34c   : > { %v420_v20 = vstv %s546_s11 }
 0x34d   : > { %v421_v22 = vsel %vm419_vm12, %v420_v20, 0.0 }
 0x34f   : > { %s548_s12 = spop %547 }
 0x350   : > { %v424_v21 = vstv %s548_s12 }
 0x351   : > { %v425_v24 = vsel %vm423_vm13, %v424_v21, 0.0 }
 0x352   : > { %v426_v25 = vadd.f32 %v425_v24, %v421_v22 }
 0x354   : > { %v427_v26 = vadd.f32 %v426_v25, %v417_v23 }
 0x356   : > { %428 = vst [vmem:[%s820_s25] sm:$0xff] %v427_v26 }
 0x357 PF: > { %s539_s13 = sshll.u32 %s694_s21, 7  ;;  %s443_s24 = sshll.u32 %s820_s25, 4  ;;  %s444_s24 = int_to_ptr.vmem [resolvable:$true] %s443_s24 }
 0x358   : > { %s856_s17 = scalar_lea.hbm %s905_s5, %s539_s13  ;;  %s430_s27 = scalar_lea.sflag [#allocation3], %s268_s16 }
 0x359   : > { %s624_s29 = scalar_lea.vmem %s444_s24, 128  ;;  %s707_s7 = smov [#allocation2]  }
 0x35a   : > { %p625_p13 = scmp.ne.s32.totalorder %s444_s24, %s624_s29  ;;  %s628_s8 = sshll.u32 %s707_s7, 4  ;;  %s629_s8 = int_to_ptr.vmem [resolvable:$false] %s628_s8 }
 0x35b   : > { %s630_s9 = scalar_lea.vmem %s629_s8, 256  ;;  %p631_p2 = scmp.lt.s32.totalorder %s444_s24, %s629_s8 }
 0x35c   : > { %p626_p0 = pnand %p625_p13, %p778_p4  ;;  %p632_p3 = scmp.lt.s32.totalorder %s630_s9, %s624_s29 }
 0x35e   : > { %p627_p1 = pneg %p626_p0  ;;  %p633_p5 = por %p632_p3, %p631_p2 }
 0x360   : > { %p634_p6 = pnand %p633_p5, %p627_p1 }
 0x362   : > { %637 = shalt.err (!%p634_p6)
}
 0x363   : > { %s638_s21 = scalar_lea.hbm %s856_s17, 128  ;;  %s642_s10 = scalar_lea.hbm %s905_s5, 256 }
 0x364   : > { %p639_p7 = scmp.ne.s32.totalorder %s856_s17, %s638_s21  ;;  %p643_p11 = scmp.lt.u32.totalorder %s856_s17, %s905_s5 }
 0x365   : > { %p644_p12 = scmp.lt.u32.totalorder %s642_s10, %s638_s21  ;;  %p646_p0 = scmp.lt.u32.totalorder %s638_s21, %s856_s17 }
 0x366   : > { %p640_p9 = pnand %p639_p7, %p778_p4 }
 0x367   : > { %p645_p13 = por %p644_p12, %p643_p11 }
 0x368   : > { %p641_p10 = pneg %p640_p9 }
 0x369   : > { %p647_p1 = por %p646_p0, %p645_p13 }
 0x36b   : > { %p648_p2 = pnand %p647_p1, %p641_p10 }
 0x36d   : > { %651 = shalt.err (!%p648_p2)
}
 0x36e   : > { %549 = dma.vmem_to_hbm [thread:$0]  (%p778_p4), %s444_s24, 128, %s856_s17, %s430_s27  }
 0x36f PF: > { %p555_p3 = scmp.ge.s32.totalorder %s702_s23, 2  ;;  %s455_s13 = sand.u32 1, %s682_s18  }
 0x370   : > { %s456_s14 = scalar_lea.sflag [#allocation3], %s455_s13 }
 0x371   : > { %p552_p5 = pnand %p555_p3, %p785_p8 }
 0x373   : > { %677 = dma.done.wait (!%p552_p5), %s456_s14, 128  }
 0x374   : > { %679 = vsyncadd (!%p552_p5), %s456_s14, 4294967168  ;;  %s18_s23 = sadd.s32 1, %s702_s23   ;;  %s908_s18 = smov %s686_s19 }
 0x375   : > { %p15_p6 = scmp.ge.s32.totalorder %s18_s23, 4   ;;  %s909_s19 = smov %s690_s20 }
 0x376   : > { %s910_s20 = smov %s791_s6  ;;  %s911_s21 = smov %s698_s22 }
 0x377   : > { %s912_s22 = smov %s914_s26  ;;  %17 = sbr.rel (!%p15_p6) target bundleno = 4 (0x4), region = 86 }
 0x37e   :  { %461 = vsyncpa [#allocation3], 1 }
 0x37f   :  { %463 = vsyncpa [#allocation3 + $0x1], 1 }

</bundles_post_ra>
